<compile_context>
chip_gen: v6e
topology: v6e:2x2x1
jax: 0.10.0
libtpu: 0.0.40
codegen_flags: <defaults>
</compile_context>

<pallas_src>
import functools

import jax
import jax.numpy as jnp
from jax.experimental import pallas as pl
from jax.experimental.pallas import tpu as pltpu


def _round_up(x, m):
    return ((x + m - 1) // m) * m


def _leaky_relu_f32(x, negative_slope=0.2):
    return jnp.where(x >= 0, x, negative_slope * x)


def decoder_block_kernel(x_ref, w_ref, b_ref, o_ref):
    """One row-tile of: LeakyReLU(x @ W + b); dropout is identity (inference)."""
    # MXU matmul: bf16 operands, f32 accumulation (K is left unpadded; the MXU
    # pads the contraction dim internally).
    x_bf16 = x_ref[...].astype(jnp.bfloat16)
    acc = jnp.dot(x_bf16, w_ref[...], preferred_element_type=jnp.float32)
    # Epilogue in f32 on the accumulator (VPU); cast only on the final store.
    acc = acc + b_ref[...]                        # (TM, out) + (1, out) broadcast
    out = _leaky_relu_f32(acc)
    # TODO(synk): training-mode Dropout(p=do_rates) would need pltpu.prng_seed /
    #             pltpu.prng_random_bits masking; inference (identity) here.
    o_ref[...] = out.astype(o_ref.dtype)


def init_decoder_block_params(key, in_dim, out_dim):
    """nn.Linear-style uniform(-1/sqrt(fan_in), 1/sqrt(fan_in)) init.
    Weight is stored pre-transposed as (in_dim, out_dim)."""
    k1, k2 = jax.random.split(key)
    lim = 1.0 / jnp.sqrt(jnp.float32(in_dim))
    w = jax.random.uniform(k1, (in_dim, out_dim), jnp.float32, -lim, lim)
    b = jax.random.uniform(k2, (1, out_dim), jnp.float32, -lim, lim)
    return w, b


def prepare_params(w, b):
    """One-time param prep: cast W to bf16 (no K-padding needed)."""
    return w.astype(jnp.bfloat16), b.astype(jnp.float32)


@functools.partial(jax.jit, static_argnames=("tm",))
def decoder_block_forward(x, w_bf16, b, *, tm=1024):
    """x: (N, in_dim) f32; w_bf16: (in_dim, out_dim) bf16; b: (1, out_dim) f32
       ->  (N, out_dim) f32."""
    n, in_dim = x.shape
    k, out_dim = w_bf16.shape
    assert k == in_dim, (k, in_dim)

    # Row tile: multiple of 8 (f32 sublane), no bigger than needed.  When the
    # batch is larger than one sublane, cap the tile so the grid has >= 2
    # steps (lets v7x's second TensorCore participate; harmless on v5e/v6e).
    tm = min(tm, _round_up(n, 8))
    if n > 8:
        tm = min(tm, _round_up((n + 1) // 2, 8))
    tm = max(tm, 8)

    grid = (pl.cdiv(n, tm),)   # ragged last block is masked by Pallas

    # VMEM budget: double-buffered x/out tiles + resident bf16 W + f32 bias +
    # an f32 accumulator temp + fixed headroom.  Cap below v7x's 64 MiB.
    vmem_bytes = 2 * tm * in_dim * 4 + 2 * tm * out_dim * 4   # pipelined x / out
    vmem_bytes += k * out_dim * 2 + out_dim * 4                # resident W + b
    vmem_bytes += tm * out_dim * 4                             # f32 acc temp
    vmem_bytes = min(max(vmem_bytes + (2 << 20), 4 << 20), 48 << 20)

    out = pl.pallas_call(
        decoder_block_kernel,
        out_shape=jax.ShapeDtypeStruct((n, out_dim), jnp.float32),
        grid=grid,
        in_specs=[
            pl.BlockSpec((tm, in_dim), lambda i: (i, 0)),       # streamed x tile
            pl.BlockSpec((in_dim, out_dim), lambda i: (0, 0)),  # weight-stationary
            pl.BlockSpec((1, out_dim), lambda i: (0, 0)),       # bias-stationary
        ],
        out_specs=pl.BlockSpec((tm, out_dim), lambda i: (i, 0)),
        compiler_params=pltpu.CompilerParams(
            dimension_semantics=("parallel",),                  # v7x: 2 TCs share grid
            vmem_limit_bytes=vmem_bytes,
        ),
    )(x, w_bf16, b)

    return out


def reference_forward(x, w_bf16, b):
    """Pure-JAX reference using the same bf16-operand / f32-accumulate math."""
    acc = jnp.dot(x.astype(jnp.bfloat16), w_bf16,
                  preferred_element_type=jnp.float32) + b
    return _leaky_relu_f32(acc)


if __name__ == "__main__":
    key = jax.random.PRNGKey(0)
    kx, kp = jax.random.split(key)

    # Small DecoderBlock(in_dim=64, out_dim=256, do_rates=0.3), batch N=32.
    N, in_dim, out_dim = 32, 64, 256
    x = jax.random.normal(kx, (N, in_dim), jnp.float32)
    w, b = init_decoder_block_params(kp, in_dim, out_dim)
    w_bf16, b_f32 = prepare_params(w, b)

    out = decoder_block_forward(x, w_bf16, b_f32)
    out = jax.block_until_ready(out)

    ref = reference_forward(x, w_bf16, b_f32)
    assert out.shape == (N, out_dim)
    assert jnp.allclose(out, ref, atol=2e-3, rtol=2e-3), float(
        jnp.max(jnp.abs(out - ref)))

    print("KERNEL_OK")
</pallas_src>

<mosaic_0001>
module attributes {stable_mosaic.version = 11 : i64} {
  func.func @decoder_block_kernel(%arg0: i32, %arg1: memref<16x64xf32, #tpu.memory_space<vmem>>, %arg2: memref<64x256xbf16, #tpu.memory_space<vmem>>, %arg3: memref<1x256xf32, #tpu.memory_space<vmem>>, %arg4: memref<16x256xf32, #tpu.memory_space<vmem>>) attributes {dimension_semantics = [#tpu.dimension_semantics<parallel>], iteration_bounds = array<i64: 2>, scalar_prefetch = 0 : i64, scratch_operands = 0 : i64, tpu.core_type = #tpu.core_type<tc>, window_params = [{transform_indices = @transform_0, window_bounds = array<i64: 16, 64>}, {pipeline_mode = #tpu.pipeline_mode<synchronous>, transform_indices = @transform_1, window_bounds = array<i64: 64, 256>}, {pipeline_mode = #tpu.pipeline_mode<synchronous>, transform_indices = @transform_2, window_bounds = array<i64: 1, 256>}, {transform_indices = @transform_3, window_bounds = array<i64: 16, 256>}]} {
    %c0 = arith.constant 0 : index
    %c0_0 = arith.constant 0 : index
    %0 = vector.load %arg1[%c0, %c0_0] : memref<16x64xf32, #tpu.memory_space<vmem>>, vector<16x64xf32>
    %1 = arith.truncf %0 : vector<16x64xf32> to vector<16x64xbf16>
    %c0_1 = arith.constant 0 : index
    %c0_2 = arith.constant 0 : index
    %2 = vector.load %arg2[%c0_1, %c0_2] : memref<64x256xbf16, #tpu.memory_space<vmem>>, vector<64x256xbf16>
    %cst = arith.constant dense<0.000000e+00> : vector<16x256xf32>
    %3 = tpu.matmul %1, %2, %cst {dimension_numbers = #tpu.dot_dimension_numbers<[1], [0], [0], [1], [0, 0, 1, 1], [], []>} : vector<16x64xbf16>, vector<64x256xbf16>, vector<16x256xf32> -> vector<16x256xf32>
    %c0_3 = arith.constant 0 : index
    %c0_4 = arith.constant 0 : index
    %4 = vector.load %arg3[%c0_3, %c0_4] : memref<1x256xf32, #tpu.memory_space<vmem>>, vector<1x256xf32>
    %5 = vector.broadcast %4 : vector<1x256xf32> to vector<16x256xf32>
    %6 = arith.addf %3, %5 : vector<16x256xf32>
    %cst_5 = arith.constant 0.000000e+00 : f32
    %7 = vector.broadcast %cst_5 : f32 to vector<16x256xf32>
    %8 = arith.cmpf oge, %6, %7 : vector<16x256xf32>
    %cst_6 = arith.constant 2.000000e-01 : f32
    %9 = vector.broadcast %cst_6 : f32 to vector<16x256xf32>
    %10 = arith.mulf %9, %6 : vector<16x256xf32>
    %11 = arith.select %8, %6, %10 : vector<16x256xi1>, vector<16x256xf32>
    %c0_7 = arith.constant 0 : index
    %c0_8 = arith.constant 0 : index
    %12 = vector.load %arg4[%c0_7, %c0_8] : memref<16x256xf32, #tpu.memory_space<vmem>>, vector<16x256xf32>
    tpu.vector_store %arg4[%c0_7, %c0_8], %11 {strides = array<i32>} : memref<16x256xf32, #tpu.memory_space<vmem>>, vector<16x256xf32>,
    return
  }
  func.func @transform_0(%arg0: i32) -> (i32, i32) {
    %c0_i32 = arith.constant 0 : i32
    %c0_i32_0 = arith.constant 0 : i32
    return %arg0, %c0_i32 : i32, i32
  }
  func.func @transform_1(%arg0: i32) -> (i32, i32) {
    %c0_i32 = arith.constant 0 : i32
    %c0_i32_0 = arith.constant 0 : i32
    %c0_i32_1 = arith.constant 0 : i32
    return %c0_i32, %c0_i32_0 : i32, i32
  }
  func.func @transform_2(%arg0: i32) -> (i32, i32) {
    %c0_i32 = arith.constant 0 : i32
    %c0_i32_0 = arith.constant 0 : i32
    %c0_i32_1 = arith.constant 0 : i32
    return %c0_i32, %c0_i32_0 : i32, i32
  }
  func.func @transform_3(%arg0: i32) -> (i32, i32) {
    %c0_i32 = arith.constant 0 : i32
    %c0_i32_0 = arith.constant 0 : i32
    return %arg0, %c0_i32 : i32, i32
  }
}

</mosaic_0001>

<bundles_post_ra>
// kernel: decoder_block_forward.1
= control target key start
LH: loop header
LB: loop body
LE: loop exit
PB: predicated region body
PF: predicated region fallthrough
CT: control target
= control target key end

     0   :  { %8 = vsyncpa [#allocation3], 0  ;;  %s873_s0 = inlined_call_operand.hbm [shape: f32[32,64], index: 0, kind: input, shape index: {}]   ;;  %s874_s1 = inlined_call_operand.hbm [shape: bf16[64,256], index: 1, kind: input, shape index: {}]   ;;  %s875_s2 = inlined_call_operand.vmem [shape: f32[1,256], index: 2, kind: input, shape index: {}]   ;;  %s876_s3 = inlined_call_operand.hbm [shape: f32[32,256], index: 3, kind: output, shape index: {}]  }
   0x1   :  { %10 = vsyncpa [#allocation3 + $0x1], 0 }
   0x2   :  { %11 = vsyncpa [#allocation6], 0 }
   0x3   :  { %12 = vsyncpa [#allocation4], 0 }
   0x4   :  { %14 = vsyncpa [#allocation4 + $0x1], 0  ;;  %s686_s12 = smov 0   ;;  %s688_s13 = smov 0  }
   0x5   :  { %s690_s14 = smov 0   ;;  %s692_s15 = smov 0  }
   0x6 LB: > { %s707_s16 = sadd.s32 4294967295, %s656_s15   ;;  %s431_s17 = sadd.s32 4294967294, %s656_s15   ;;  %s656_s15 = sphi %s692_s15, %s898_s15   ;;  %s652_s14 = sphi %s690_s14, %s897_s14   ;;  %s648_s13 = sphi %s688_s13, %s896_s13   ;;  %s644_s12 = sphi %s686_s12, %s895_s12  }
   0x7   : > { %p40_p0 = scmp.ne.s32.totalorder %s648_s13, %s644_s12  ;;  %p877_p1 = scmp.eq.s32.totalorder %s707_s16, 0 }
   0x8   : > { %p112_p3 = scmp.eq.s32.totalorder %s431_s17, 1  ;;  %p432_p5 = scmp.ge.s32.totalorder %s656_s15, 1 }
   0x9   : > { %p716_p4 = por %p877_p1, %p40_p0  ;;  %p119_p7 = scmp.lt.s32.totalorder %s656_s15, 3 }
   0xa   : > { %p721_p6 = por %p112_p3, %p40_p0  ;;  %s658_s21 = smov [#allocation5]  }
   0xb   : > { %s881_s18 = scalar_select %p716_p4, 1, 0 }
   0xc   : > { %s882_s19 = scalar_select %p721_p6, 1, 0 }
   0xd   : > { %p726_p8 = pnand %p432_p5, %p119_p7  ;;  %s131_s22 = sshll.u32 %s658_s21, 4  ;;  %s132_s22 = int_to_ptr.vmem [resolvable:$true] %s131_s22 }
   0xe   : > { %s740_s24 = sadd.s32 1, %s656_s15   ;;  %s27_s25 = sadd.s32 1, %s652_s14 }
   0xf   : > { %s883_s20 = scalar_select %p726_p8, 1, 0 }
  0x10   : > { %p468_p9 = pneg %p726_p8  ;;  %s24_s26 = ssub.s32 %s656_s15, %s740_s24 }
  0x11   : > { %s545_s27 = scalar_lea.vmem %s132_s22, 1024  ;;  %p553_p5 = scmp.lt.s32.totalorder %s132_s22, %s132_s22 }
  0x12   : > { %p735_p11 = pnand %p468_p9, %p877_p1  ;;  %p546_p13 = scmp.ne.s32.totalorder %s132_s22, %s545_s27 }
  0x13   : > { %p554_p7 = scmp.lt.s32.totalorder %s545_s27, %s545_s27 }
  0x14   : > { %p536_p12 = pneg %p735_p11 }
  0x15   : > { %p555_p10 = por %p554_p7, %p553_p5 }
  0x16   : > { %p548_p0 = pnand %p546_p13, %p536_p12 }
  0x18   : > { %p549_p3 = pneg %p548_p0 }
  0x1a   : > { %p556_p2 = pnand %p555_p10, %p549_p3 }
  0x1c   : > { %559 = shalt.err (!%p556_p2)
}
  0x1d   : > { %s659_s28 = smov 128   ;;  %s660_s29 = smov 8  }
  0x1e   : > { %471 = dma.hbm_to_vmem [thread:$0]  (!%p735_p11), %s874_s1, 1024, %s132_s22, [#allocation6], %s659_s28, %s659_s28, %s660_s29  }
  0x1f   : > { %p25_p2 = scmp.eq.s32.totalorder %s24_s26, 0  ;;  %p34_p9 = scmp.ne.s32.totalorder %s652_s14, %s648_s13 }
  0x20   : > { %p35_p10 = scmp.eq.s32.totalorder %s656_s15, 0  ;;  %p481_p12 = scmp.lt.s32.totalorder %s656_s15, 2 }
  0x21   : > { %s760_s5 = scalar_select %p25_p2, %s652_s14, %s27_s25  }
  0x22   : > { %p36_p13 = por %p35_p10, %p34_p9  ;;  %p885_p0 = scmp.eq.s32.totalorder %s707_s16, 1 }
  0x23   : > { %s148_s7 = sand.u32 1, %s652_s14   ;;  %s457_s8 = sshll.u32 %s656_s15, 8 }
  0x24   : > { %p764_p3 = por %p885_p0, %p34_p9  ;;  %s435_s9 = sshll.u32 %s148_s7, 4 }
  0x25   : > { %s773_s17 = scalar_lea.hbm %s873_s0, %s457_s8  ;;  %s152_s21 = scalar_lea.vmem [#allocation2], %s435_s9 }
  0x26   : > { %s886_s6 = scalar_select %p764_p3, 1, 0 }
  0x27   : > { %s159_s22 = sshll.u32 %s152_s21, 4  ;;  %p775_p11 = pnand %p481_p12, %p36_p13  ;;  %s779_s22 = int_to_ptr.vmem [resolvable:$true] %s159_s22 }
  0x28   : > { %s781_s25 = scalar_lea.sflag [#allocation3], %s148_s7  ;;  %s560_s26 = scalar_lea.hbm %s773_s17, 256 }
  0x29   : > { %p561_p5 = scmp.ne.s32.totalorder %s773_s17, %s560_s26  ;;  %p562_p7 = pneg %p775_p11 }
  0x2a   : > { %s565_s4 = scalar_lea.hbm %s873_s0, 512  ;;  %p566_p10 = scmp.lt.s32.totalorder %s773_s17, %s873_s0 }
  0x2b   : > { %p563_p2 = pnand %p562_p7, %p561_p5  ;;  %p567_p12 = scmp.lt.s32.totalorder %s565_s4, %s560_s26 }
  0x2d   : > { %p564_p9 = pneg %p563_p2  ;;  %p568_p13 = por %p567_p12, %p566_p10 }
  0x2f   : > { %p569_p0 = pnand %p568_p13, %p564_p9 }
  0x31   : > { %572 = shalt.err (!%p569_p0)
}
  0x32   : > { %s573_s7 = scalar_lea.vmem %s779_s22, 256  ;;  %s661_s10 = smov [#allocation2]  }
  0x33   : > { %p574_p1 = scmp.ne.s32.totalorder %s779_s22, %s573_s7  ;;  %s578_s11 = sshll.u32 %s661_s10, 4  ;;  %s579_s11 = int_to_ptr.vmem [resolvable:$false] %s578_s11 }
  0x34   : > { %s580_s21 = scalar_lea.vmem %s579_s11, 512  ;;  %p581_p2 = scmp.lt.s32.totalorder %s779_s22, %s579_s11 }
  0x35   : > { %p576_p6 = pnand %p574_p1, %p562_p7  ;;  %p582_p3 = scmp.lt.s32.totalorder %s580_s21, %s573_s7 }
  0x37   : > { %p577_p5 = pneg %p576_p6  ;;  %p583_p4 = por %p582_p3, %p581_p2 }
  0x39   : > { %p584_p8 = pnand %p583_p4, %p577_p5 }
  0x3b   : > { %587 = shalt.err (!%p584_p8)
}
  0x3c   : > { %475 = dma.hbm_to_vmem [thread:$0]  (!%p775_p11), %s773_s17, 256, %s779_s22, %s781_s25, %s659_s28, %s659_s28, %s660_s29  }
  0x3d   : > { %p888_p1 = scmp.ne.s32.totalorder %s883_s20, 0 }
  0x3e   : > { %s808_s26 = sand.u32 (!%p888_p1), 1, %s648_s13   ;;  %p889_p4 = scmp.ne.s32.totalorder (!%p888_p1), %s881_s18, 0 }
  0x3f   : > { %171 = sbr.rel (%p888_p1) target bundleno = 307 (0x133), region = 32  ;;  %s439_s27 = sshll.u32 (!%p888_p1), %s808_s26, 4 }
  0x40   : > { %s174_s30 = scalar_lea.sflag (!%p888_p1), [#allocation3], %s808_s26  ;;  %s177_s4 = scalar_lea.vmem (!%p888_p1), [#allocation2], %s439_s27 }
  0x44   : > { %631 = dma.done.wait (%p889_p4), %s174_s30, 256  }
  0x45   : > { %633 = vsyncadd (%p889_p4), %s174_s30, 4294967040  ;;  %p890_p6 = scmp.eq.s32.totalorder %s707_s16, 0 }
  0x47   : > { %635 = dma.done.wait (%p890_p6), [#allocation6], 1024   ;;  %p891_p8 = pmov %p890_p6 }
  0x48   : > { %v662_v0 = vmov 0   ;;  %v522_v1 = vld [vmem:[#allocation5 + $0x34] ss:$8 sps:$4 sm:$0xff]   ;;  %v524_v2 = vld [vmem:[#allocation5 + $0x30] ss:$8 sps:$4 sm:$0xff]   ;;  %vm270_vm0 = vcmask 523264   ;;  %v220_v12 = vlaneseq }
  0x49   : > { %637 = vsyncadd (%p891_p8), [#allocation6], 4294966272  ;;  %306 = vmatprep.mubr.bf16.mxu0 %v662_v0  ;;  %282 = vmatprep.subr.bf16.mxu0 %v522_v1  ;;  %v525_v3 = vld [vmem:[#allocation5 + $0x24] ss:$8 sps:$4 sm:$0xff]   ;;  %v527_v4 = vld [vmem:[#allocation5 + $0x20] ss:$8 sps:$4 sm:$0xff]  }
  0x4a   : > { %283 = vmatpush1.bf16.msra.mxu0 %v524_v2  ;;  %v528_v5 = vld [vmem:[#allocation5 + $0x14] ss:$8 sps:$4 sm:$0xff]   ;;  %v530_v6 = vld [vmem:[#allocation5 + $0x10] ss:$8 sps:$4 sm:$0xff]   ;;  %v531_v7 = vld [vmem:[#allocation5 + $0x4] ss:$8 sps:$4 sm:$0xff]  }
  0x4b   : > { %284 = vmatprep.subr.bf16.mxu0 %v525_v3  ;;  %v533_v8 = vld [vmem:[#allocation5] ss:$8 sps:$4 sm:$0xff]   ;;  %v221_v13 = vshrl.u32 %v220_v12, 7  ;;  %s441_s28 = sshll.u32 %s808_s26, 5  ;;  %s459_s22 = sshll.u32 %s707_s16, 9 }
  0x4c   : > { %v207_v9 = vld [vmem:[%s177_s4] sm:$0xff]  ;;  %v208_v10 = vld [vmem:[%s177_s4 + $0x8] sm:$0xff]  ;;  %s203_s29 = scalar_lea.vmem [#allocation7], %s441_s28  ;;  %s830_s8 = scalar_lea.hbm %s876_s3, %s459_s22 }
  0x4d   : > { %v209_v11 = vpack.c.bf16 %v208_v10, %v207_v9  ;;  %v222_v14 = vsub.s32 0, %v221_v13  ;;  %v218_v15 = vld [vmem:[%s875_s2] sm:$0x3]  ;;  %v226_v16 = vsub.s32 1, %v221_v13  ;;  %s348_s17 = sshll.u32 %s203_s29, 4  ;;  %s334_s16 = scalar_lea.sflag [#allocation4], %s808_s26  ;;  %s825_s17 = int_to_ptr.vmem [resolvable:$true] %s348_s17 }
  0x4e   : > { %285 = vmatpush1.bf16.msra.mxu0 %v527_v4  ;;  %s588_s9 = scalar_lea.vmem %s825_s17, 512  ;;  %p892_p11 = scmp.ne.s32.totalorder %s886_s6, 0 }
  0x4f   : > { %286 = vmatprep.subr.bf16.mxu0 %v528_v5  ;;  %v223_v17 = vrot.slane %v218_v15, %v222_v14  ;;  %v227_v18 = vrot.slane %v218_v15, %v226_v16  ;;  %p589_p3 = scmp.ne.s32.totalorder %s825_s17, %s588_s9  ;;  %s663_s7 = smov [#allocation7]  }
  0x50   : > { %s592_s10 = sshll.u32 %s663_s7, 4  ;;  %s593_s10 = int_to_ptr.vmem [resolvable:$false] %s592_s10 }
  0x51   : > { %p590_p7 = pnand %p589_p3, %p892_p11  ;;  %s594_s11 = scalar_lea.vmem %s593_s10, 1024 }
  0x52   : > { %287 = vmatpush1.bf16.msra.mxu0 %v530_v6  ;;  %p595_p10 = scmp.lt.s32.totalorder %s825_s17, %s593_s10  ;;  %p596_p12 = scmp.lt.s32.totalorder %s594_s11, %s588_s9 }
  0x53   : > { %288 = vmatprep.subr.bf16.mxu0 %v531_v7  ;;  %p591_p9 = pneg %p590_p7 }
  0x54   : > { %p597_p13 = por %p596_p12, %p595_p10 }
  0x56   : > { %289 = vmatpush1.bf16.msra.mxu0 %v533_v8  ;;  %p598_p0 = pnand %p597_p13, %p591_p9 }
  0x59   : > { %450 = vmatmul.mubr.msk.bf16.vlgmr.msra.gmra.mxu0 %vm270_vm0, %v209_v11 }
 0x119   : > { %v308_v19 = vpop.f32.mrf.mxu0 }
 0x11a   : > { %v309_v20 = vadd.f32 %v308_v19, %v223_v17 }
 0x11b   : > { %v310_v21 = vpop.f32.mrf.mxu0 }
 0x11c   : > { %vm317_vm1 = vcmp.ge.f32.partialorder %v309_v20, 0.0  ;;  %v321_v22 = vmul.f32 0.2, %v309_v20  ;;  %v311_v23 = vadd.f32 %v310_v21, %v227_v18 }
 0x11d   : > { %v312_v24 = vpop.f32.mrf.mxu0 }
 0x11e   : > { %v325_v25 = vsel %vm317_vm1, %v309_v20, %v321_v22  ;;  %vm318_vm2 = vcmp.ge.f32.partialorder %v311_v23, 0.0  ;;  %v322_v26 = vmul.f32 0.2, %v311_v23  ;;  %v313_v27 = vadd.f32 %v312_v24, %v223_v17 }
 0x11f   : > { %329 = vst [vmem:[%s203_s29] sm:$0xff] %v325_v25  ;;  %v314_v28 = vpop.f32.mrf.mxu0 }
 0x120   : > { %v326_v29 = vsel %vm318_vm2, %v311_v23, %v322_v26  ;;  %vm319_vm3 = vcmp.ge.f32.partialorder %v313_v27, 0.0  ;;  %v323_v30 = vmul.f32 0.2, %v313_v27  ;;  %v315_v31 = vadd.f32 %v314_v28, %v227_v18 }
 0x121   : > { %330 = vst [vmem:[%s203_s29 + $0x8] sm:$0xff] %v326_v29 }
 0x122   : > { %v327_v32 = vsel %vm319_vm3, %v313_v27, %v323_v30  ;;  %vm320_vm4 = vcmp.ge.f32.partialorder %v315_v31, 0.0  ;;  %v324_v33 = vmul.f32 0.2, %v315_v31 }
 0x123   : > { %331 = vst [vmem:[%s203_s29 + $0x10] sm:$0xff] %v327_v32 }
 0x124   : > { %v328_v34 = vsel %vm320_vm4, %v315_v31, %v324_v33 }
 0x125   : > { %332 = vst [vmem:[%s203_s29 + $0x18] sm:$0xff] %v328_v34 }
 0x126   : > { %601 = shalt.err (!%p598_p0)
}
 0x127   : > { %s602_s21 = scalar_lea.hbm %s830_s8, 512  ;;  %s606_s4 = scalar_lea.hbm %s876_s3, 1024 }
 0x128   : > { %p603_p5 = scmp.ne.s32.totalorder %s830_s8, %s602_s21  ;;  %p607_p4 = scmp.lt.s32.totalorder %s830_s8, %s876_s3 }
 0x129   : > { %p608_p6 = scmp.lt.s32.totalorder %s606_s4, %s602_s21 }
 0x12a   : > { %p604_p2 = pnand %p603_p5, %p892_p11 }
 0x12b   : > { %p609_p8 = por %p608_p6, %p607_p4 }
 0x12c   : > { %p605_p1 = pneg %p604_p2 }
 0x12e   : > { %p610_p3 = pnand %p609_p8, %p605_p1 }
 0x130   : > { %613 = shalt.err (!%p610_p3)
}
 0x131   : > { %s664_s28 = smov 256   ;;  %s665_s29 = smov 16  }
 0x132   : > { %466 = dma.vmem_to_hbm [thread:$0]  (%p892_p11), %s825_s17, 512, %s830_s8, %s334_s16, %s664_s28, %s664_s28, %s665_s29  }
 0x133 PF: > { %s363_s22 = sand.u32 1, %s644_s12   ;;  %p893_p7 = scmp.ne.s32.totalorder %s882_s19, 0 }
 0x134   : > { %p894_p9 = scmp.ge.s32.totalorder %s656_s15, 2  ;;  %s364_s23 = scalar_lea.sflag [#allocation4], %s363_s22 }
 0x136   : > { %p477_p10 = pnand %p894_p9, %p893_p7 }
 0x138   : > { %p478_p12 = pneg %p477_p10 }
 0x13a   : > { %639 = dma.done.wait (%p478_p12), %s364_s23, 512  }
 0x13b   : > { %641 = vsyncadd (%p478_p12), %s364_s23, 4294966784  ;;  %p17_p13 = scmp.ge.s32.totalorder %s740_s24, 4   ;;  %s895_s12 = smov %s648_s13 }
 0x13c   : > { %s896_s13 = smov %s652_s14  ;;  %s897_s14 = smov %s760_s5 }
 0x13d   : > { %s898_s15 = smov %s740_s24  ;;  %19 = sbr.rel (!%p17_p13) target bundleno = 6 (0x6), region = 81 }
 0x142   :  { %369 = vsyncpa [#allocation3], 1 }
 0x143   :  { %371 = vsyncpa [#allocation3 + $0x1], 1 }
 0x144   :  { %372 = vsyncpa [#allocation6], 1 }
 0x145   :  { %373 = vsyncpa [#allocation4], 1 }
 0x146   :  { %375 = vsyncpa [#allocation4 + $0x1], 1 }

</bundles_post_ra>
